<compile_context>
chip_gen: v7x
topology: tpu7x:2x2x1
jax: 0.10.0
libtpu: 0.0.40
codegen_flags: <defaults>
</compile_context>

<pallas_src>
import jax
import jax.numpy as jnp
from jax import lax
from jax.experimental import pallas as pl
from jax.experimental.pallas import tpu as pltpu


def prepare_params(w1, b1, w2, b2, inputs):
    """One-time parameter preparation (hoisted out of the hot path).

    w1: (hidden, inputs+states)  [PyTorch Linear layout, cat order = [x, state]]
    w2: (states, hidden)
    Returns weights laid out for `x @ W`:
      w1x (inputs, hidden), w1s (states, hidden), b1 (1, hidden),
      w2t (hidden, states), b2 (1, states)
    """
    w1 = jnp.asarray(w1, jnp.float32)
    w2 = jnp.asarray(w2, jnp.float32)
    w1x = w1[:, :inputs].T
    w1s = w1[:, inputs:].T
    w2t = w2.T
    b1_2d = jnp.asarray(b1, jnp.float32).reshape(1, -1)
    b2_2d = jnp.asarray(b2, jnp.float32).reshape(1, -1)
    return w1x, w1s, b1_2d, w2t, b2_2d


def _make_kernel(sample_rate, n_states, hidden, pack):
    sr = float(sample_rate)  # baked-in immediate, no SMEM scalar operand

    def kernel(xp_ref, s0_ref, w1s_ref, w2_ref, b2_ref,
               traj_ref, sfin_ref, s_vmem):
        B = s0_ref.shape[0]
        S = n_states

        # Initialize the resident recurrent state from HBM on the first block.
        @pl.when(pl.program_id(0) == 0)
        def _():
            s_vmem[...] = s0_ref[...]

        # Loop-invariant pre-broadcasts, hoisted out of the time loop
        # (JAX does not CSE broadcast_in_dim; re-emitting these per step would
        # put ~20+ broadcast/relayout ops on every iteration).
        w1s_b = [jnp.broadcast_to(w1s_ref[k:k + 1, :], (B, hidden))
                 for k in range(S)]                      # S x (B, H)
        w2_b = [jnp.broadcast_to(w2_ref[j:j + 1, :], (B, S))
                for j in range(hidden)]                  # H x (B, S)
        b2_b = jnp.broadcast_to(b2_ref[...], (B, S))     # (B, S)

        n_groups = traj_ref.shape[0]                     # groups per block

        def group_body(g, s):
            t0 = pl.multiple_of(g * pack, pack)
            # `pack` statically-unrolled steps; the recurrence is a single
            # serial chain, the per-step x load / traj store are off-chain.
            for p in range(pack):
                xp_t = xp_ref[t0 + p]                    # (B, H): x@W1x + b1
                # Layer 1: only the state FMAs remain (input proj precomputed).
                h_pre = xp_t
                for k in range(S):
                    h_pre = h_pre + s[:, k:k + 1] * w1s_b[k]
                h = jnp.tanh(h_pre)                      # (B, H)   EUP
                # Layer 2 on the VPU: H pre-broadcast row FMAs, 4 partial sums
                # (no MXU push/pop on the serial chain).
                n_par = 4
                partial = [None] * n_par
                for j in range(hidden):
                    prod = h[:, j:j + 1] * w2_b[j]
                    q = j % n_par
                    partial[q] = prod if partial[q] is None else partial[q] + prod
                acc = b2_b
                for q in range(n_par):
                    if partial[q] is not None:
                        acc = acc + partial[q]
                fx = jnp.tanh(acc)                       # (B, S)   EUP
                s = s + sr * fx                          # Euler update
                # Lane-dense packed trajectory: step p of group g lands at
                # lanes [p*S, (p+1)*S) of a 128-lane output row, so the HBM
                # writeback DMA is dense (no 64x lane padding).
                traj_ref[g, :, p * S:(p + 1) * S] = s
            return s

        s_final = lax.fori_loop(0, n_groups, group_body, s_vmem[...])
        s_vmem[...] = s_final        # carry state across grid steps

        @pl.when(pl.program_id(0) == pl.num_programs(0) - 1)
        def _():
            sfin_ref[...] = s_final  # final-state output, last block only

    return kernel


def stn_sequence(x_seq, state0, params, sample_rate, *, t_block=None, pack=None):
    """Run T Euler steps of the STN in a single fused pallas_call.

    x_seq:  (T, B, inputs) f32
    state0: (B, states)    f32
    Returns (traj, state_final); traj[t] is the state after step t (exactly
    what forward() returns at each step in the PyTorch module).
    """
    w1x, w1s, b1, w2t, b2 = params
    x_seq = jnp.asarray(x_seq, jnp.float32)
    state0 = jnp.asarray(state0, jnp.float32)
    T, B, n_inputs = x_seq.shape
    n_states = state0.shape[1]
    hidden = w1x.shape[1]

    # --- block / pack sizing (padded-footprint aware) ----------------------
    if t_block is None:
        # Each time step costs ~4 KiB of padded VMEM per (t, B, ·) array,
        # double-buffered; cap at 512 steps per block (~4 MiB total, well
        # under every generation's scoped VMEM limit and v7x's 64 MiB).
        t_block = min(T, 512)
        while T % t_block:
            t_block -= 1
    assert T % t_block == 0, "T must be divisible by t_block"

    if pack is None:
        # pack*states == 128 lanes -> one dense (8,128) traj tile per group.
        pack = min(t_block, max(1, 128 // max(1, n_states)))
        while t_block % pack:
            pack -= 1
    assert t_block % pack == 0, "t_block must be divisible by pack"

    groups_per_block = t_block // pack
    grid = (T // t_block,)

    # --- input projection precomputed outside the recurrence ---------------
    # x_t @ W1x + b1 does not depend on state; one big XLA matmul here removes
    # the per-step x load/FMA from the serial chain inside the kernel.
    xproj = (x_seq.reshape(T * B, n_inputs) @ w1x + b1).reshape(T, B, hidden)
    xproj = xproj.astype(jnp.float32)

    kernel = _make_kernel(sample_rate, n_states, hidden, pack)

    # --- explicit VMEM limit from the PADDED footprint ---------------------
    pad_sub = -(-B // 8) * 8
    pad_h = -(-hidden // 128) * 128
    pad_traj = -(-(pack * n_states) // 128) * 128
    block_bytes = 4 * (t_block * pad_sub * pad_h                     # xproj
                       + groups_per_block * pad_sub * pad_traj)      # traj
    vmem_limit = int(min(2 * block_bytes + (4 << 20), 64 << 20))     # 2x dbl-buf

    grid_spec = pltpu.PrefetchScalarGridSpec(
        num_scalar_prefetch=0,
        grid=grid,
        in_specs=[
            pl.BlockSpec((t_block, B, hidden), lambda i: (i, 0, 0)),   # xproj
            pl.BlockSpec((B, n_states), lambda i: (0, 0)),             # state0
            pl.BlockSpec((n_states, hidden), lambda i: (0, 0)),        # w1s
            pl.BlockSpec((hidden, n_states), lambda i: (0, 0)),        # w2t
            pl.BlockSpec((1, n_states), lambda i: (0, 0)),             # b2
        ],
        out_specs=[
            pl.BlockSpec((groups_per_block, B, pack * n_states),
                         lambda i: (i, 0, 0)),                         # packed traj
            pl.BlockSpec((B, n_states), lambda i: (0, 0)),             # final state
        ],
        scratch_shapes=[pltpu.VMEM((B, n_states), jnp.float32)],
    )

    traj_packed, state_final = pl.pallas_call(
        kernel,
        out_shape=(
            jax.ShapeDtypeStruct((T // pack, B, pack * n_states), jnp.float32),
            jax.ShapeDtypeStruct((B, n_states), jnp.float32),
        ),
        grid_spec=grid_spec,
        compiler_params=pltpu.CompilerParams(
            dimension_semantics=("arbitrary",),   # recurrence over time
            vmem_limit_bytes=vmem_limit),
    )(xproj, state0, w1s, w2t, b2)

    # Unpack (T//pack, B, pack*states) -> (T, B, states) in XLA.
    traj = traj_packed.reshape(T // pack, B, pack, n_states)
    traj = traj.transpose(0, 2, 1, 3).reshape(T, B, n_states)
    return traj, state_final


def stn_forward(x, state, params, sample_rate):
    """Single Euler step — same semantics as the PyTorch module's forward()."""
    _, state_new = stn_sequence(x[None], state, params, sample_rate,
                                t_block=1, pack=1)
    return state_new


# ----------------------------- pure-JAX references -------------------------

def stn_step_reference(state, x, w1, b1, w2, b2, sample_rate):
    xs = jnp.concatenate([x, state], axis=1)
    h = jnp.tanh(xs @ w1.T + b1)
    fx = jnp.tanh(h @ w2.T + b2)
    return state + sample_rate * fx


def stn_scan_reference(x_seq, state0, w1, b1, w2, b2, sample_rate):
    def body(s, x):
        s2 = stn_step_reference(s, x, w1, b1, w2, b2, sample_rate)
        return s2, s2
    s_final, traj = lax.scan(body, state0, x_seq)
    return traj, s_final


if __name__ == "__main__":
    hidden_size, states, inputs = 20, 2, 1
    B = 8          # batch
    T = 64         # time steps in the fused-sequence test
    t_block = 32   # grid of 2 blocks exercises state carry across grid steps
    pack = 8       # small pack keeps the test's unrolled body / compile small

    key = jax.random.PRNGKey(0)
    k_x, k_s, k_w1, k_b1, k_w2, k_b2 = jax.random.split(key, 6)

    # PyTorch-style uniform(-1/sqrt(fan_in), +1/sqrt(fan_in)) parameters
    fan1 = states + inputs
    fan2 = hidden_size
    w1 = jax.random.uniform(k_w1, (hidden_size, fan1), jnp.float32,
                            -1.0 / fan1 ** 0.5, 1.0 / fan1 ** 0.5)
    b1 = jax.random.uniform(k_b1, (hidden_size,), jnp.float32,
                            -1.0 / fan1 ** 0.5, 1.0 / fan1 ** 0.5)
    w2 = jax.random.uniform(k_w2, (states, fan2), jnp.float32,
                            -1.0 / fan2 ** 0.5, 1.0 / fan2 ** 0.5)
    b2 = jax.random.uniform(k_b2, (states,), jnp.float32,
                            -1.0 / fan2 ** 0.5, 1.0 / fan2 ** 0.5)

    x_seq = jax.random.normal(k_x, (T, B, inputs), jnp.float32)
    state0 = jax.random.normal(k_s, (B, states), jnp.float32)

    sample_rate = 1.5 * 44100.0 / 44100.0   # set_samp_rate(44100) -> 1.5

    params = prepare_params(w1, b1, w2, b2, inputs)   # one-time setup

    # references
    ref_step = stn_step_reference(state0, x_seq[0], w1, b1, w2, b2, sample_rate)
    ref_traj, ref_final = stn_scan_reference(x_seq, state0, w1, b1, w2, b2,
                                             sample_rate)

    # 1) single-step forward (matches the PyTorch module's forward())
    out_step = jax.block_until_ready(
        stn_forward(x_seq[0], state0, params, sample_rate))
    assert out_step.shape == (B, states)
    assert jnp.allclose(out_step, ref_step, atol=1e-5, rtol=1e-5)

    # 2) fused multi-step sequence (the optimized path)
    traj, state_final = stn_sequence(x_seq, state0, params, sample_rate,
                                     t_block=t_block, pack=pack)
    traj = jax.block_until_ready(traj)
    state_final = jax.block_until_ready(state_final)
    assert traj.shape == (T, B, states)
    assert state_final.shape == (B, states)
    # recurrent fp32 rounding differences accumulate over T steps
    assert jnp.allclose(traj, ref_traj, atol=1e-3, rtol=1e-3)
    assert jnp.allclose(state_final, ref_final, atol=1e-3, rtol=1e-3)

    print("KERNEL_OK")
</pallas_src>

<mosaic_0001>
module attributes {stable_mosaic.version = 11 : i64} {
  func.func @kernel(%arg0: i32, %arg1: memref<1x8x20xf32, #tpu.memory_space<vmem>>, %arg2: memref<8x2xf32, #tpu.memory_space<vmem>>, %arg3: memref<2x20xf32, #tpu.memory_space<vmem>>, %arg4: memref<20x2xf32, #tpu.memory_space<vmem>>, %arg5: memref<1x2xf32, #tpu.memory_space<vmem>>, %arg6: memref<1x8x2xf32, #tpu.memory_space<vmem>>, %arg7: memref<8x2xf32, #tpu.memory_space<vmem>>, %arg8: memref<8x2xf32, #tpu.memory_space<vmem>>) attributes {dimension_semantics = [#tpu.dimension_semantics<arbitrary>], iteration_bounds = array<i64: 1>, scalar_prefetch = 0 : i64, scratch_operands = 1 : i64, tpu.core_type = #tpu.core_type<tc>, window_params = [{transform_indices = @transform_0, window_bounds = array<i64: 1, 8, 20>}, {pipeline_mode = #tpu.pipeline_mode<synchronous>, transform_indices = @transform_1, window_bounds = array<i64: 8, 2>}, {pipeline_mode = #tpu.pipeline_mode<synchronous>, transform_indices = @transform_2, window_bounds = array<i64: 2, 20>}, {pipeline_mode = #tpu.pipeline_mode<synchronous>, transform_indices = @transform_3, window_bounds = array<i64: 20, 2>}, {pipeline_mode = #tpu.pipeline_mode<synchronous>, transform_indices = @transform_4, window_bounds = array<i64: 1, 2>}, {transform_indices = @transform_5, window_bounds = array<i64: 1, 8, 2>}, {pipeline_mode = #tpu.pipeline_mode<synchronous>, transform_indices = @transform_6, window_bounds = array<i64: 8, 2>}]} {
    %c0_i32 = arith.constant 0 : i32
    %0 = arith.cmpi eq, %arg0, %c0_i32 : i32
    %1 = arith.extui %0 : i1 to i32
    %c0_i32_0 = arith.constant 0 : i32
    %2 = arith.cmpi ne, %1, %c0_i32_0 : i32
    scf.if %2 {
      %c0_40 = arith.constant 0 : index
      %c0_41 = arith.constant 0 : index
      %180 = vector.load %arg2[%c0_40, %c0_41] : memref<8x2xf32, #tpu.memory_space<vmem>>, vector<8x2xf32>
      %c0_42 = arith.constant 0 : index
      %c0_43 = arith.constant 0 : index
      %181 = vector.load %arg8[%c0_42, %c0_43] : memref<8x2xf32, #tpu.memory_space<vmem>>, vector<8x2xf32>
      tpu.vector_store %arg8[%c0_42, %c0_43], %180 {strides = array<i32>} : memref<8x2xf32, #tpu.memory_space<vmem>>, vector<8x2xf32>,
    } else {
    }
    %c0 = arith.constant 0 : index
    %c0_1 = arith.constant 0 : index
    %3 = vector.load %arg3[%c0, %c0_1] : memref<2x20xf32, #tpu.memory_space<vmem>>, vector<1x20xf32>
    %4 = vector.shape_cast %3 : vector<1x20xf32> to vector<1x20xf32>
    %5 = vector.broadcast %4 : vector<1x20xf32> to vector<8x20xf32>
    %c1 = arith.constant 1 : index
    %c0_2 = arith.constant 0 : index
    %6 = vector.load %arg3[%c1, %c0_2] : memref<2x20xf32, #tpu.memory_space<vmem>>, vector<1x20xf32>
    %7 = vector.shape_cast %6 : vector<1x20xf32> to vector<1x20xf32>
    %8 = vector.broadcast %7 : vector<1x20xf32> to vector<8x20xf32>
    %c0_3 = arith.constant 0 : index
    %c0_4 = arith.constant 0 : index
    %9 = vector.load %arg4[%c0_3, %c0_4] : memref<20x2xf32, #tpu.memory_space<vmem>>, vector<1x2xf32>
    %10 = vector.shape_cast %9 : vector<1x2xf32> to vector<1x2xf32>
    %11 = vector.broadcast %10 : vector<1x2xf32> to vector<8x2xf32>
    %c1_5 = arith.constant 1 : index
    %c0_6 = arith.constant 0 : index
    %12 = vector.load %arg4[%c1_5, %c0_6] : memref<20x2xf32, #tpu.memory_space<vmem>>, vector<1x2xf32>
    %13 = vector.shape_cast %12 : vector<1x2xf32> to vector<1x2xf32>
    %14 = vector.broadcast %13 : vector<1x2xf32> to vector<8x2xf32>
    %c2 = arith.constant 2 : index
    %c0_7 = arith.constant 0 : index
    %15 = vector.load %arg4[%c2, %c0_7] : memref<20x2xf32, #tpu.memory_space<vmem>>, vector<1x2xf32>
    %16 = vector.shape_cast %15 : vector<1x2xf32> to vector<1x2xf32>
    %17 = vector.broadcast %16 : vector<1x2xf32> to vector<8x2xf32>
    %c3 = arith.constant 3 : index
    %c0_8 = arith.constant 0 : index
    %18 = vector.load %arg4[%c3, %c0_8] : memref<20x2xf32, #tpu.memory_space<vmem>>, vector<1x2xf32>
    %19 = vector.shape_cast %18 : vector<1x2xf32> to vector<1x2xf32>
    %20 = vector.broadcast %19 : vector<1x2xf32> to vector<8x2xf32>
    %c4 = arith.constant 4 : index
    %c0_9 = arith.constant 0 : index
    %21 = vector.load %arg4[%c4, %c0_9] : memref<20x2xf32, #tpu.memory_space<vmem>>, vector<1x2xf32>
    %22 = vector.shape_cast %21 : vector<1x2xf32> to vector<1x2xf32>
    %23 = vector.broadcast %22 : vector<1x2xf32> to vector<8x2xf32>
    %c5 = arith.constant 5 : index
    %c0_10 = arith.constant 0 : index
    %24 = vector.load %arg4[%c5, %c0_10] : memref<20x2xf32, #tpu.memory_space<vmem>>, vector<1x2xf32>
    %25 = vector.shape_cast %24 : vector<1x2xf32> to vector<1x2xf32>
    %26 = vector.broadcast %25 : vector<1x2xf32> to vector<8x2xf32>
    %c6 = arith.constant 6 : index
    %c0_11 = arith.constant 0 : index
    %27 = vector.load %arg4[%c6, %c0_11] : memref<20x2xf32, #tpu.memory_space<vmem>>, vector<1x2xf32>
    %28 = vector.shape_cast %27 : vector<1x2xf32> to vector<1x2xf32>
    %29 = vector.broadcast %28 : vector<1x2xf32> to vector<8x2xf32>
    %c7 = arith.constant 7 : index
    %c0_12 = arith.constant 0 : index
    %30 = vector.load %arg4[%c7, %c0_12] : memref<20x2xf32, #tpu.memory_space<vmem>>, vector<1x2xf32>
    %31 = vector.shape_cast %30 : vector<1x2xf32> to vector<1x2xf32>
    %32 = vector.broadcast %31 : vector<1x2xf32> to vector<8x2xf32>
    %c8 = arith.constant 8 : index
    %c0_13 = arith.constant 0 : index
    %33 = vector.load %arg4[%c8, %c0_13] : memref<20x2xf32, #tpu.memory_space<vmem>>, vector<1x2xf32>
    %34 = vector.shape_cast %33 : vector<1x2xf32> to vector<1x2xf32>
    %35 = vector.broadcast %34 : vector<1x2xf32> to vector<8x2xf32>
    %c9 = arith.constant 9 : index
    %c0_14 = arith.constant 0 : index
    %36 = vector.load %arg4[%c9, %c0_14] : memref<20x2xf32, #tpu.memory_space<vmem>>, vector<1x2xf32>
    %37 = vector.shape_cast %36 : vector<1x2xf32> to vector<1x2xf32>
    %38 = vector.broadcast %37 : vector<1x2xf32> to vector<8x2xf32>
    %c10 = arith.constant 10 : index
    %c0_15 = arith.constant 0 : index
    %39 = vector.load %arg4[%c10, %c0_15] : memref<20x2xf32, #tpu.memory_space<vmem>>, vector<1x2xf32>
    %40 = vector.shape_cast %39 : vector<1x2xf32> to vector<1x2xf32>
    %41 = vector.broadcast %40 : vector<1x2xf32> to vector<8x2xf32>
    %c11 = arith.constant 11 : index
    %c0_16 = arith.constant 0 : index
    %42 = vector.load %arg4[%c11, %c0_16] : memref<20x2xf32, #tpu.memory_space<vmem>>, vector<1x2xf32>
    %43 = vector.shape_cast %42 : vector<1x2xf32> to vector<1x2xf32>
    %44 = vector.broadcast %43 : vector<1x2xf32> to vector<8x2xf32>
    %c12 = arith.constant 12 : index
    %c0_17 = arith.constant 0 : index
    %45 = vector.load %arg4[%c12, %c0_17] : memref<20x2xf32, #tpu.memory_space<vmem>>, vector<1x2xf32>
    %46 = vector.shape_cast %45 : vector<1x2xf32> to vector<1x2xf32>
    %47 = vector.broadcast %46 : vector<1x2xf32> to vector<8x2xf32>
    %c13 = arith.constant 13 : index
    %c0_18 = arith.constant 0 : index
    %48 = vector.load %arg4[%c13, %c0_18] : memref<20x2xf32, #tpu.memory_space<vmem>>, vector<1x2xf32>
    %49 = vector.shape_cast %48 : vector<1x2xf32> to vector<1x2xf32>
    %50 = vector.broadcast %49 : vector<1x2xf32> to vector<8x2xf32>
    %c14 = arith.constant 14 : index
    %c0_19 = arith.constant 0 : index
    %51 = vector.load %arg4[%c14, %c0_19] : memref<20x2xf32, #tpu.memory_space<vmem>>, vector<1x2xf32>
    %52 = vector.shape_cast %51 : vector<1x2xf32> to vector<1x2xf32>
    %53 = vector.broadcast %52 : vector<1x2xf32> to vector<8x2xf32>
    %c15 = arith.constant 15 : index
    %c0_20 = arith.constant 0 : index
    %54 = vector.load %arg4[%c15, %c0_20] : memref<20x2xf32, #tpu.memory_space<vmem>>, vector<1x2xf32>
    %55 = vector.shape_cast %54 : vector<1x2xf32> to vector<1x2xf32>
    %56 = vector.broadcast %55 : vector<1x2xf32> to vector<8x2xf32>
    %c16 = arith.constant 16 : index
    %c0_21 = arith.constant 0 : index
    %57 = vector.load %arg4[%c16, %c0_21] : memref<20x2xf32, #tpu.memory_space<vmem>>, vector<1x2xf32>
    %58 = vector.shape_cast %57 : vector<1x2xf32> to vector<1x2xf32>
    %59 = vector.broadcast %58 : vector<1x2xf32> to vector<8x2xf32>
    %c17 = arith.constant 17 : index
    %c0_22 = arith.constant 0 : index
    %60 = vector.load %arg4[%c17, %c0_22] : memref<20x2xf32, #tpu.memory_space<vmem>>, vector<1x2xf32>
    %61 = vector.shape_cast %60 : vector<1x2xf32> to vector<1x2xf32>
    %62 = vector.broadcast %61 : vector<1x2xf32> to vector<8x2xf32>
    %c18 = arith.constant 18 : index
    %c0_23 = arith.constant 0 : index
    %63 = vector.load %arg4[%c18, %c0_23] : memref<20x2xf32, #tpu.memory_space<vmem>>, vector<1x2xf32>
    %64 = vector.shape_cast %63 : vector<1x2xf32> to vector<1x2xf32>
    %65 = vector.broadcast %64 : vector<1x2xf32> to vector<8x2xf32>
    %c19 = arith.constant 19 : index
    %c0_24 = arith.constant 0 : index
    %66 = vector.load %arg4[%c19, %c0_24] : memref<20x2xf32, #tpu.memory_space<vmem>>, vector<1x2xf32>
    %67 = vector.shape_cast %66 : vector<1x2xf32> to vector<1x2xf32>
    %68 = vector.broadcast %67 : vector<1x2xf32> to vector<8x2xf32>
    %c0_25 = arith.constant 0 : index
    %c0_26 = arith.constant 0 : index
    %69 = vector.load %arg5[%c0_25, %c0_26] : memref<1x2xf32, #tpu.memory_space<vmem>>, vector<1x2xf32>
    %70 = vector.shape_cast %69 : vector<1x2xf32> to vector<1x2xf32>
    %71 = vector.broadcast %70 : vector<1x2xf32> to vector<8x2xf32>
    %c0_27 = arith.constant 0 : index
    %c0_28 = arith.constant 0 : index
    %72 = vector.load %arg8[%c0_27, %c0_28] : memref<8x2xf32, #tpu.memory_space<vmem>>, vector<8x2xf32>
    %c0_i32_29 = arith.constant 0 : i32
    %c1_i32 = arith.constant 1 : i32
    %73 = arith.muli %c0_i32_29, %c1_i32 : i32
    %74 = tpu.assume_multiple %73, 1 : i32
    %c0_i32_30 = arith.constant 0 : i32
    %75 = arith.addi %74, %c0_i32_30 : i32
    %76 = arith.index_cast %75 : i32 to index
    %c0_31 = arith.constant 0 : index
    %c0_32 = arith.constant 0 : index
    %77 = vector.load %arg1[%76, %c0_31, %c0_32] : memref<1x8x20xf32, #tpu.memory_space<vmem>>, vector<1x8x20xf32>
    %78 = vector.shape_cast %77 : vector<1x8x20xf32> to vector<8x20xf32>
    %79 = vector.extract_strided_slice %72 {offsets = [0, 0], sizes = [8, 1], strides = [1, 1]} : vector<8x2xf32> to vector<8x1xf32>
    %80 = vector.broadcast %79 : vector<8x1xf32> to vector<8x20xf32>
    %81 = arith.mulf %80, %5 : vector<8x20xf32>
    %82 = arith.addf %78, %81 : vector<8x20xf32>
    %83 = vector.extract_strided_slice %72 {offsets = [0, 1], sizes = [8, 1], strides = [1, 1]} : vector<8x2xf32> to vector<8x1xf32>
    %84 = vector.broadcast %83 : vector<8x1xf32> to vector<8x20xf32>
    %85 = arith.mulf %84, %8 : vector<8x20xf32>
    %86 = arith.addf %82, %85 : vector<8x20xf32>
    %87 = math.tanh %86 : vector<8x20xf32>
    %88 = vector.extract_strided_slice %87 {offsets = [0, 0], sizes = [8, 1], strides = [1, 1]} : vector<8x20xf32> to vector<8x1xf32>
    %89 = vector.broadcast %88 : vector<8x1xf32> to vector<8x2xf32>
    %90 = arith.mulf %89, %11 : vector<8x2xf32>
    %91 = vector.extract_strided_slice %87 {offsets = [0, 1], sizes = [8, 1], strides = [1, 1]} : vector<8x20xf32> to vector<8x1xf32>
    %92 = vector.broadcast %91 : vector<8x1xf32> to vector<8x2xf32>
    %93 = arith.mulf %92, %14 : vector<8x2xf32>
    %94 = vector.extract_strided_slice %87 {offsets = [0, 2], sizes = [8, 1], strides = [1, 1]} : vector<8x20xf32> to vector<8x1xf32>
    %95 = vector.broadcast %94 : vector<8x1xf32> to vector<8x2xf32>
    %96 = arith.mulf %95, %17 : vector<8x2xf32>
    %97 = vector.extract_strided_slice %87 {offsets = [0, 3], sizes = [8, 1], strides = [1, 1]} : vector<8x20xf32> to vector<8x1xf32>
    %98 = vector.broadcast %97 : vector<8x1xf32> to vector<8x2xf32>
    %99 = arith.mulf %98, %20 : vector<8x2xf32>
    %100 = vector.extract_strided_slice %87 {offsets = [0, 4], sizes = [8, 1], strides = [1, 1]} : vector<8x20xf32> to vector<8x1xf32>
    %101 = vector.broadcast %100 : vector<8x1xf32> to vector<8x2xf32>
    %102 = arith.mulf %101, %23 : vector<8x2xf32>
    %103 = arith.addf %90, %102 : vector<8x2xf32>
    %104 = vector.extract_strided_slice %87 {offsets = [0, 5], sizes = [8, 1], strides = [1, 1]} : vector<8x20xf32> to vector<8x1xf32>
    %105 = vector.broadcast %104 : vector<8x1xf32> to vector<8x2xf32>
    %106 = arith.mulf %105, %26 : vector<8x2xf32>
    %107 = arith.addf %93, %106 : vector<8x2xf32>
    %108 = vector.extract_strided_slice %87 {offsets = [0, 6], sizes = [8, 1], strides = [1, 1]} : vector<8x20xf32> to vector<8x1xf32>
    %109 = vector.broadcast %108 : vector<8x1xf32> to vector<8x2xf32>
    %110 = arith.mulf %109, %29 : vector<8x2xf32>
    %111 = arith.addf %96, %110 : vector<8x2xf32>
    %112 = vector.extract_strided_slice %87 {offsets = [0, 7], sizes = [8, 1], strides = [1, 1]} : vector<8x20xf32> to vector<8x1xf32>
    %113 = vector.broadcast %112 : vector<8x1xf32> to vector<8x2xf32>
    %114 = arith.mulf %113, %32 : vector<8x2xf32>
    %115 = arith.addf %99, %114 : vector<8x2xf32>
    %116 = vector.extract_strided_slice %87 {offsets = [0, 8], sizes = [8, 1], strides = [1, 1]} : vector<8x20xf32> to vector<8x1xf32>
    %117 = vector.broadcast %116 : vector<8x1xf32> to vector<8x2xf32>
    %118 = arith.mulf %117, %35 : vector<8x2xf32>
    %119 = arith.addf %103, %118 : vector<8x2xf32>
    %120 = vector.extract_strided_slice %87 {offsets = [0, 9], sizes = [8, 1], strides = [1, 1]} : vector<8x20xf32> to vector<8x1xf32>
    %121 = vector.broadcast %120 : vector<8x1xf32> to vector<8x2xf32>
    %122 = arith.mulf %121, %38 : vector<8x2xf32>
    %123 = arith.addf %107, %122 : vector<8x2xf32>
    %124 = vector.extract_strided_slice %87 {offsets = [0, 10], sizes = [8, 1], strides = [1, 1]} : vector<8x20xf32> to vector<8x1xf32>
    %125 = vector.broadcast %124 : vector<8x1xf32> to vector<8x2xf32>
    %126 = arith.mulf %125, %41 : vector<8x2xf32>
    %127 = arith.addf %111, %126 : vector<8x2xf32>
    %128 = vector.extract_strided_slice %87 {offsets = [0, 11], sizes = [8, 1], strides = [1, 1]} : vector<8x20xf32> to vector<8x1xf32>
    %129 = vector.broadcast %128 : vector<8x1xf32> to vector<8x2xf32>
    %130 = arith.mulf %129, %44 : vector<8x2xf32>
    %131 = arith.addf %115, %130 : vector<8x2xf32>
    %132 = vector.extract_strided_slice %87 {offsets = [0, 12], sizes = [8, 1], strides = [1, 1]} : vector<8x20xf32> to vector<8x1xf32>
    %133 = vector.broadcast %132 : vector<8x1xf32> to vector<8x2xf32>
    %134 = arith.mulf %133, %47 : vector<8x2xf32>
    %135 = arith.addf %119, %134 : vector<8x2xf32>
    %136 = vector.extract_strided_slice %87 {offsets = [0, 13], sizes = [8, 1], strides = [1, 1]} : vector<8x20xf32> to vector<8x1xf32>
    %137 = vector.broadcast %136 : vector<8x1xf32> to vector<8x2xf32>
    %138 = arith.mulf %137, %50 : vector<8x2xf32>
    %139 = arith.addf %123, %138 : vector<8x2xf32>
    %140 = vector.extract_strided_slice %87 {offsets = [0, 14], sizes = [8, 1], strides = [1, 1]} : vector<8x20xf32> to vector<8x1xf32>
    %141 = vector.broadcast %140 : vector<8x1xf32> to vector<8x2xf32>
    %142 = arith.mulf %141, %53 : vector<8x2xf32>
    %143 = arith.addf %127, %142 : vector<8x2xf32>
    %144 = vector.extract_strided_slice %87 {offsets = [0, 15], sizes = [8, 1], strides = [1, 1]} : vector<8x20xf32> to vector<8x1xf32>
    %145 = vector.broadcast %144 : vector<8x1xf32> to vector<8x2xf32>
    %146 = arith.mulf %145, %56 : vector<8x2xf32>
    %147 = arith.addf %131, %146 : vector<8x2xf32>
    %148 = vector.extract_strided_slice %87 {offsets = [0, 16], sizes = [8, 1], strides = [1, 1]} : vector<8x20xf32> to vector<8x1xf32>
    %149 = vector.broadcast %148 : vector<8x1xf32> to vector<8x2xf32>
    %150 = arith.mulf %149, %59 : vector<8x2xf32>
    %151 = arith.addf %135, %150 : vector<8x2xf32>
    %152 = vector.extract_strided_slice %87 {offsets = [0, 17], sizes = [8, 1], strides = [1, 1]} : vector<8x20xf32> to vector<8x1xf32>
    %153 = vector.broadcast %152 : vector<8x1xf32> to vector<8x2xf32>
    %154 = arith.mulf %153, %62 : vector<8x2xf32>
    %155 = arith.addf %139, %154 : vector<8x2xf32>
    %156 = vector.extract_strided_slice %87 {offsets = [0, 18], sizes = [8, 1], strides = [1, 1]} : vector<8x20xf32> to vector<8x1xf32>
    %157 = vector.broadcast %156 : vector<8x1xf32> to vector<8x2xf32>
    %158 = arith.mulf %157, %65 : vector<8x2xf32>
    %159 = arith.addf %143, %158 : vector<8x2xf32>
    %160 = vector.extract_strided_slice %87 {offsets = [0, 19], sizes = [8, 1], strides = [1, 1]} : vector<8x20xf32> to vector<8x1xf32>
    %161 = vector.broadcast %160 : vector<8x1xf32> to vector<8x2xf32>
    %162 = arith.mulf %161, %68 : vector<8x2xf32>
    %163 = arith.addf %147, %162 : vector<8x2xf32>
    %164 = arith.addf %71, %151 : vector<8x2xf32>
    %165 = arith.addf %164, %155 : vector<8x2xf32>
    %166 = arith.addf %165, %159 : vector<8x2xf32>
    %167 = arith.addf %166, %163 : vector<8x2xf32>
    %168 = math.tanh %167 : vector<8x2xf32>
    %cst = arith.constant 1.500000e+00 : f32
    %169 = vector.broadcast %cst : f32 to vector<8x2xf32>
    %170 = arith.mulf %169, %168 : vector<8x2xf32>
    %171 = arith.addf %72, %170 : vector<8x2xf32>
    %172 = arith.index_cast %c0_i32_29 : i32 to index
    %c0_33 = arith.constant 0 : index
    %c0_34 = arith.constant 0 : index
    %173 = vector.load %arg6[%172, %c0_33, %c0_34] : memref<1x8x2xf32, #tpu.memory_space<vmem>>, vector<1x8x2xf32>
    %174 = vector.shape_cast %173 : vector<1x8x2xf32> to vector<8x2xf32>
    %175 = vector.shape_cast %171 : vector<8x2xf32> to vector<1x8x2xf32>
    tpu.vector_store %arg6[%172, %c0_33, %c0_34], %175 {strides = array<i32>} : memref<1x8x2xf32, #tpu.memory_space<vmem>>, vector<1x8x2xf32>,
    %c1_i32_35 = arith.constant 1 : i32
    %c0_36 = arith.constant 0 : index
    %c0_37 = arith.constant 0 : index
    %176 = vector.load %arg8[%c0_36, %c0_37] : memref<8x2xf32, #tpu.memory_space<vmem>>, vector<8x2xf32>
    tpu.vector_store %arg8[%c0_36, %c0_37], %171 {strides = array<i32>} : memref<8x2xf32, #tpu.memory_space<vmem>>, vector<8x2xf32>,
    %c0_i32_38 = arith.constant 0 : i32
    %177 = arith.cmpi eq, %arg0, %c0_i32_38 : i32
    %178 = arith.extui %177 : i1 to i32
    %c0_i32_39 = arith.constant 0 : i32
    %179 = arith.cmpi ne, %178, %c0_i32_39 : i32
    scf.if %179 {
      %c0_40 = arith.constant 0 : index
      %c0_41 = arith.constant 0 : index
      %180 = vector.load %arg7[%c0_40, %c0_41] : memref<8x2xf32, #tpu.memory_space<vmem>>, vector<8x2xf32>
      tpu.vector_store %arg7[%c0_40, %c0_41], %171 {strides = array<i32>} : memref<8x2xf32, #tpu.memory_space<vmem>>, vector<8x2xf32>,
    } else {
    }
    return
  }
  func.func @transform_0(%arg0: i32) -> (i32, i32, i32) {
    %c0_i32 = arith.constant 0 : i32
    %c0_i32_0 = arith.constant 0 : i32
    %c0_i32_1 = arith.constant 0 : i32
    return %arg0, %c0_i32, %c0_i32_0 : i32, i32, i32
  }
  func.func @transform_1(%arg0: i32) -> (i32, i32) {
    %c0_i32 = arith.constant 0 : i32
    %c0_i32_0 = arith.constant 0 : i32
    %c0_i32_1 = arith.constant 0 : i32
    return %c0_i32, %c0_i32_0 : i32, i32
  }
  func.func @transform_2(%arg0: i32) -> (i32, i32) {
    %c0_i32 = arith.constant 0 : i32
    %c0_i32_0 = arith.constant 0 : i32
    %c0_i32_1 = arith.constant 0 : i32
    return %c0_i32, %c0_i32_0 : i32, i32
  }
  func.func @transform_3(%arg0: i32) -> (i32, i32) {
    %c0_i32 = arith.constant 0 : i32
    %c0_i32_0 = arith.constant 0 : i32
    %c0_i32_1 = arith.constant 0 : i32
    return %c0_i32, %c0_i32_0 : i32, i32
  }
  func.func @transform_4(%arg0: i32) -> (i32, i32) {
    %c0_i32 = arith.constant 0 : i32
    %c0_i32_0 = arith.constant 0 : i32
    %c0_i32_1 = arith.constant 0 : i32
    return %c0_i32, %c0_i32_0 : i32, i32
  }
  func.func @transform_5(%arg0: i32) -> (i32, i32, i32) {
    %c0_i32 = arith.constant 0 : i32
    %c0_i32_0 = arith.constant 0 : i32
    %c0_i32_1 = arith.constant 0 : i32
    return %arg0, %c0_i32, %c0_i32_0 : i32, i32, i32
  }
  func.func @transform_6(%arg0: i32) -> (i32, i32) {
    %c0_i32 = arith.constant 0 : i32
    %c0_i32_0 = arith.constant 0 : i32
    %c0_i32_1 = arith.constant 0 : i32
    return %c0_i32, %c0_i32_0 : i32, i32
  }
}

</mosaic_0001>

<bundles_post_ra>
// kernel: tpu_custom_call.1
= control target key start
LH: loop header
LB: loop body
LE: loop exit
PB: predicated region body
PF: predicated region fallthrough
CT: control target
= control target key end

     0   :  { %vm27_vm0 = vcmask 15360   ;;  %v373_v0 = vmov 0   ;;  %v374_v3 = vmov 1   ;;  %v375_v4 = vmov 5   ;;  %s518_s1 = inlined_call_operand.vmem [shape: f32[8,2], index: 1, kind: input, shape index: {}]   ;;  %s519_s2 = inlined_call_operand.vmem [shape: f32[2,20], index: 2, kind: input, shape index: {}]   ;;  %s520_s0 = inlined_call_operand.vmem [shape: f32[1,8,20], index: 0, kind: input, shape index: {}]   ;;  %s521_s3 = inlined_call_operand.vmem [shape: f32[20,2], index: 3, kind: input, shape index: {}]   ;;  %s522_s4 = inlined_call_operand.vmem [shape: f32[1,2], index: 4, kind: input, shape index: {}]   ;;  %s523_s5 = inlined_call_operand.vmem [shape: f32[1,8,2], index: 5, kind: output, shape index: {0}]   ;;  %s524_s6 = inlined_call_operand.vmem [shape: f32[8,2], index: 6, kind: output, shape index: {1}]  }
   0x1   :  { %346 = vset.pattern.permute.xlu0 %v373_v0  ;;  %v26_v1 = vld [vmem:[%s518_s1] sm:$0xff]  ;;  %348 = vset.pattern.permute.xlu1 %v373_v0  ;;  %v376_v15 = vmov 6   ;;  %v377_v16 = vmov 4   ;;  %v378_v17 = vmov 3   ;;  %v379_v18 = vmov 13  }
   0x2   :  { %28 = vst.msk [vmem:[#allocation2] sm:$0xff] %vm27_vm0, %v26_v1  ;;  %v303_v5 = vld [vmem:[%s519_s2] ss:$0 sm:$0xff]  ;;  %v304_v9 = vld [vmem:[%s519_s2 + $0x1] ss:$0 sm:$0xff]  ;;  %v380_v19 = vmov 8  }
   0x3   :  { %v149_v8 = vld [vmem:[%s520_s0] sm:$0xff]  ;;  %v381_v20 = vmov 14   ;;  %v382_v21 = vmov 2   ;;  %v383_v22 = vmov 18   ;;  %v384_v23 = vmov 9  }
   0x4   :  { %v385_v24 = vmov 12   ;;  %v386_v25 = vmov 19   ;;  %v387_v26 = vmov 7   ;;  %v388_v27 = vmov 10   ;;  %v309_v44 = vld [vmem:[%s521_s3 + $0x4] ss:$0 sm:$0xff] }
   0x5   :  { %v389_v28 = vmov 16   ;;  %v390_v29 = vmov 11   ;;  %v391_v30 = vmov 17   ;;  %v392_v31 = vmov 15   ;;  %v306_v45 = vld [vmem:[%s521_s3 + $0x1] ss:$0 sm:$0xff] }
   0x6   :  { %v310_v47 = vld [vmem:[%s521_s3 + $0x5] ss:$0 sm:$0xff]  ;;  %v305_v48 = vld [vmem:[%s521_s3] ss:$0 sm:$0xff]  ;;  %v313_v49 = vld [vmem:[%s521_s3 + $0x8] ss:$0 sm:$0xff] }
   0x7   :  { %v314_v50 = vld [vmem:[%s521_s3 + $0x9] ss:$0 sm:$0xff]  ;;  %v307_v54 = vld [vmem:[%s521_s3 + $0x2] ss:$0 sm:$0xff]  ;;  %v317_v55 = vld [vmem:[%s521_s3 + $0xc] ss:$0 sm:$0xff] }
   0x8   :  { %v311_v58 = vld [vmem:[%s521_s3 + $0x6] ss:$0 sm:$0xff]  ;;  %v315_v62 = vld [vmem:[%s521_s3 + $0xa] ss:$0 sm:$0xff]  ;;  %v321_v63 = vld [vmem:[%s521_s3 + $0x10] ss:$0 sm:$0xff] }
   0x9   :  { %v432_v2 = vld [vmem:[#allocation2] sm:$0xff] }
   0xa   :  { %152 = vperm.xlu0 %346, %v432_v2  }
   0xe   :  { %347 = vset.pattern.permute.xlu0 %v374_v3 }
   0xf   :  { %158 = vperm.xlu0 %347, %v432_v2  }
  0x13   :  { %351 = vset.pattern.permute.xlu0 %v375_v4 }
  0x89   :  { %v153_v6 = vpop.permute.xlu0 %152 }
  0x8a   :  { %v155_v7 = vmul.f32 %v303_v5, %v153_v6  ;;  %v318_v6 = vld [vmem:[%s521_s3 + $0xd] ss:$0 sm:$0xff] }
  0x8c   :  { %v156_v11 = vadd.f32 %v155_v7, %v149_v8  ;;  %v322_v7 = vld [vmem:[%s521_s3 + $0x11] ss:$0 sm:$0xff] }
  0x8e   :  { %v159_v10 = vpop.permute.xlu0 %158 }
  0x8f   :  { %v161_v12 = vmul.f32 %v304_v9, %v159_v10 }
  0x91   :  { %v162_v13 = vadd.f32 %v161_v12, %v156_v11 }
  0x93   :  { %369 = vtanh.f32 %v162_v13  ;;  %v312_v13 = vld [vmem:[%s521_s3 + $0x7] ss:$0 sm:$0xff] }
  0x9d   :  { %v370_v14 = vpop.eup %369 }
  0x9e   :  { %192 = vperm.xlu0 %351, %v370_v14   ;;  %166 = vperm.xlu1 %348, %v370_v14  }
  0xa2   :  { %354 = vset.pattern.permute.xlu0 %v376_v15  ;;  %349 = vset.pattern.permute.xlu1 %v377_v16 }
  0xa3   :  { %198 = vperm.xlu0 %354, %v370_v14   ;;  %186 = vperm.xlu1 %349, %v370_v14  }
  0xa7   :  { %357 = vset.pattern.permute.xlu0 %v378_v17  ;;  %350 = vset.pattern.permute.xlu1 %v374_v3 }
  0xa8   :  { %181 = vperm.xlu0 %357, %v370_v14   ;;  %171 = vperm.xlu1 %350, %v370_v14  }
  0xac   :  { %360 = vset.pattern.permute.xlu0 %v379_v18  ;;  %352 = vset.pattern.permute.xlu1 %v380_v19  ;;  %v308_v19 = vld [vmem:[%s521_s3 + $0x3] ss:$0 sm:$0xff] }
  0xad   :  { %240 = vperm.xlu0 %360, %v370_v14   ;;  %210 = vperm.xlu1 %352, %v370_v14  }
  0xb1   :  { %363 = vset.pattern.permute.xlu0 %v381_v20  ;;  %353 = vset.pattern.permute.xlu1 %v382_v21  ;;  %v319_v20 = vld [vmem:[%s521_s3 + $0xe] ss:$0 sm:$0xff]  ;;  %v316_v21 = vld [vmem:[%s521_s3 + $0xb] ss:$0 sm:$0xff] }
  0xb2   :  { %246 = vperm.xlu0 %363, %v370_v14   ;;  %176 = vperm.xlu1 %353, %v370_v14  }
  0xb6   :  { %366 = vset.pattern.permute.xlu0 %v383_v22  ;;  %355 = vset.pattern.permute.xlu1 %v384_v23 }
  0xb7   :  { %270 = vperm.xlu0 %366, %v370_v14   ;;  %216 = vperm.xlu1 %355, %v370_v14  }
  0xbb   :  { %356 = vset.pattern.permute.xlu1 %v385_v24  ;;  %368 = vset.pattern.permute.xlu0 %v386_v25 }
  0xbc   :  { %234 = vperm.xlu1 %356, %v370_v14  }
  0xc0   :  { %358 = vset.pattern.permute.xlu1 %v387_v26  ;;  %v325_v26 = vld [vmem:[%s522_s4] ss:$0 sm:$0xff] }
  0xc1   :  { %204 = vperm.xlu1 %358, %v370_v14  }
  0xc5   :  { %359 = vset.pattern.permute.xlu1 %v388_v27  ;;  %v320_v27 = vld [vmem:[%s521_s3 + $0xf] ss:$0 sm:$0xff] }
  0xc6   :  { %222 = vperm.xlu1 %359, %v370_v14  }
  0xca   :  { %361 = vset.pattern.permute.xlu1 %v389_v28 }
  0xcb   :  { %258 = vperm.xlu1 %361, %v370_v14  }
  0xcf   :  { %362 = vset.pattern.permute.xlu1 %v390_v29 }
  0xd0   :  { %228 = vperm.xlu1 %362, %v370_v14  }
  0xd4   :  { %364 = vset.pattern.permute.xlu1 %v391_v30 }
  0xd5   :  { %264 = vperm.xlu1 %364, %v370_v14  }
  0xd9   :  { %365 = vset.pattern.permute.xlu1 %v392_v31 }
  0xda   :  { %252 = vperm.xlu1 %365, %v370_v14  }
  0xde   :  { %367 = vset.pattern.permute.xlu1 %v386_v25 }
  0xdf   :  { %276 = vperm.xlu1 %367, %v370_v14  }
 0x11d   :  { %v167_v32 = vpop.permute.xlu1 %166  ;;  %v193_v39 = vpop.permute.xlu0 %192 }
 0x11e   :  { %v195_v56 = vmul.f32 %v310_v47, %v193_v39  ;;  %v169_v57 = vmul.f32 %v305_v48, %v167_v32  ;;  %v324_v39 = vld [vmem:[%s521_s3 + $0x13] ss:$0 sm:$0xff] }
 0x122   :  { %v187_v33 = vpop.permute.xlu1 %186  ;;  %v199_v41 = vpop.permute.xlu0 %198 }
 0x123   :  { %v189_v51 = vmul.f32 %v309_v44, %v187_v33  ;;  %v201_v5 = vmul.f32 %v311_v58, %v199_v41  ;;  %v323_v33 = vld [vmem:[%s521_s3 + $0x12] ss:$0 sm:$0xff] }
 0x125   :  { %v190_v0 = vadd.f32 %v189_v51, %v169_v57 }
 0x127   :  { %v172_v34 = vpop.permute.xlu1 %171  ;;  %v182_v43 = vpop.permute.xlu0 %181 }
 0x128   :  { %v174_v52 = vmul.f32 %v306_v45, %v172_v34  ;;  %v184_v28 = vmul.f32 %v308_v19, %v182_v43 }
 0x12a   :  { %v196_v1 = vadd.f32 %v195_v56, %v174_v52 }
 0x12c   :  { %v211_v35 = vpop.permute.xlu1 %210  ;;  %v241_v53 = vpop.permute.xlu0 %240 }
 0x12d   :  { %v213_v59 = vmul.f32 %v313_v49, %v211_v35  ;;  %v243_v15 = vmul.f32 %v318_v6, %v241_v53 }
 0x12f   :  { %v214_v8 = vadd.f32 %v213_v59, %v190_v0 }
 0x131   :  { %v177_v36 = vpop.permute.xlu1 %176  ;;  %v247_v12 = vpop.permute.xlu0 %246 }
 0x132   :  { %v179_v3 = vmul.f32 %v307_v54, %v177_v36  ;;  %v249_v29 = vmul.f32 %v319_v20, %v247_v12 }
 0x134   :  { %v202_v16 = vadd.f32 %v201_v5, %v179_v3 }
 0x136   :  { %v217_v37 = vpop.permute.xlu1 %216  ;;  %v271_v34 = vpop.permute.xlu0 %270 }
 0x137   :  { %v219_v60 = vmul.f32 %v314_v50, %v217_v37 }
 0x139   :  { %v220_v9 = vadd.f32 %v219_v60, %v196_v1 }
 0x13b   :  { %v235_v38 = vpop.permute.xlu1 %234  ;;  %v244_v25 = vadd.f32 %v243_v15, %v220_v9 }
 0x13c   :  { %v237_v4 = vmul.f32 %v317_v55, %v235_v38 }
 0x13e   :  { %v238_v17 = vadd.f32 %v237_v4, %v214_v8 }
 0x140   :  { %v205_v40 = vpop.permute.xlu1 %204 }
 0x141   :  { %v207_v22 = vmul.f32 %v312_v13, %v205_v40  ;;  %v273_v40 = vmul.f32 %v323_v33, %v271_v34 }
 0x143   :  { %v208_v35 = vadd.f32 %v207_v22, %v184_v28 }
 0x145   :  { %v223_v42 = vpop.permute.xlu1 %222 }
 0x146   :  { %v225_v10 = vmul.f32 %v315_v62, %v223_v42 }
 0x148   :  { %v226_v23 = vadd.f32 %v225_v10, %v202_v16 }
 0x14a   :  { %v259_v46 = vpop.permute.xlu1 %258  ;;  %v250_v36 = vadd.f32 %v249_v29, %v226_v23 }
 0x14b   :  { %v261_v11 = vmul.f32 %v321_v63, %v259_v46 }
 0x14c   :  { %v274_v44 = vadd.f32 %v273_v40, %v250_v36 }
 0x14d   :  { %v262_v24 = vadd.f32 %v261_v11, %v238_v17 }
 0x14f   :  { %v229_v61 = vpop.permute.xlu1 %228  ;;  %v281_v37 = vadd.f32 %v325_v26, %v262_v24 }
 0x150   :  { %v231_v30 = vmul.f32 %v316_v21, %v229_v61 }
 0x152   :  { %v232_v41 = vadd.f32 %v231_v30, %v208_v35 }
 0x154   :  { %v265_v14 = vpop.permute.xlu1 %264 }
 0x155   :  { %v267_v18 = vmul.f32 %v322_v7, %v265_v14 }
 0x157   :  { %v268_v31 = vadd.f32 %v267_v18, %v244_v25 }
 0x159   :  { %v253_v32 = vpop.permute.xlu1 %252  ;;  %v282_v42 = vadd.f32 %v281_v37, %v268_v31 }
 0x15a   :  { %v255_v38 = vmul.f32 %v320_v27, %v253_v32 }
 0x15b   :  { %v283_v47 = vadd.f32 %v282_v42, %v274_v44 }
 0x15c   :  { %v256_v45 = vadd.f32 %v255_v38, %v232_v41 }
 0x15e   :  { %v277_v43 = vpop.permute.xlu1 %276 }
 0x15f   :  { %v279_v46 = vmul.f32 %v324_v39, %v277_v43 }
 0x161   :  { %v280_v48 = vadd.f32 %v279_v46, %v256_v45 }
 0x163   :  { %v284_v49 = vadd.f32 %v283_v47, %v280_v48 }
 0x165   :  { %371 = vtanh.f32 %v284_v49 }
 0x16f   :  { %v372_v50 = vpop.eup %371 }
 0x170   :  { %v286_v51 = vmul.f32 1.5, %v372_v50 }
 0x172   :  { %v287_v52 = vadd.f32 %v286_v51, %v432_v2 }
 0x174   :  { %289 = vst.msk [vmem:[%s523_s5] sm:$0xff] %vm27_vm0, %v287_v52  ;;  %290 = vst.msk [vmem:[#allocation2] sm:$0xff] %vm27_vm0, %v287_v52 }
 0x175   :  { %294 = vst.msk [vmem:[%s524_s6] sm:$0xff] %vm27_vm0, %v287_v52 }

</bundles_post_ra>
